<compile_context>
chip_gen: v5e
topology: v5e:2x2
jax: 0.10.0
libtpu: 0.0.40
codegen_flags: <defaults>
</compile_context>

<pallas_src>
import functools

import jax
import jax.numpy as jnp
import numpy as np
from jax import lax
from jax.experimental import pallas as pl
from jax.experimental.pallas import tpu as pltpu

_HALO = 128                        # lane-aligned halo block; covers kernel_size - 1 <= 128 taps
_VMEM_LIMIT = 48 * 1024 * 1024     # below v7x's 64 MiB physical VMEM; leaves Mosaic headroom


def _conv_tile(x_main, x_halo, w2d, *, kernel_size, l_tile):
    """One conv output tile (C_out, l_tile) f32 from a haloed bf16 input slab."""
    # Load the slab once and build the K shifted taps from it (lane shifts on the XLU) instead
    # of K unaligned VMEM re-loads; everything stays bf16 until the single MXU matmul.
    slab = jnp.concatenate([x_main, x_halo], axis=-1)               # (C_in_p, l_tile+128) bf16
    taps = [slab[:, k:k + l_tile] for k in range(kernel_size)]      # K x (C_in_p, l_tile)
    col = jnp.concatenate(taps, axis=0)                             # (K*C_in_p, l_tile) bf16
    return jnp.dot(w2d, col, preferred_element_type=jnp.float32)    # (C_out, l_tile) f32


def _stats_kernel(x_ref, xh_ref, w_ref, stats_ref, *, kernel_size, l_tile, l_out):
    # x_ref:     (1, C_in_p, L_tile) bf16   main input tile
    # xh_ref:    (1, C_in_p, 128)    bf16   right halo
    # w_ref:     (C_out, K*C_in_p)   bf16   tap-major folded conv weight
    # stats_ref: (1, 1, C_out, 2)    f32    per-tile per-channel [sum, sum_sq]
    j = pl.program_id(1)
    y = _conv_tile(x_ref[0], xh_ref[0], w_ref[...],
                   kernel_size=kernel_size, l_tile=l_tile)

    def _write(yv):
        stats_ref[...] = jnp.concatenate(
            [jnp.sum(yv, axis=-1, keepdims=True),
             jnp.sum(yv * yv, axis=-1, keepdims=True)], axis=-1)[None, None]

    if l_out % l_tile == 0:                 # static: no ragged tail anywhere
        _write(y)
    else:
        last = pl.num_programs(1) - 1

        @pl.when(j < last)                  # interior tiles: plain sums, no mask VPU work
        def _():
            _write(y)

        @pl.when(j == last)                 # last tile: mask conv lanes beyond L_out
        def _():
            lane = lax.broadcasted_iota(jnp.int32, y.shape, 1)
            _write(jnp.where(lane < (l_out - j * l_tile), y, 0.0))


def _conv_bn_act_kernel(x_ref, xh_ref, w_ref, scale_ref, shift_ref, o_ref, *,
                        kernel_size, l_tile, negative_slope):
    # Recompute the conv tile (cheaper than an f32 HBM round trip) and fuse BN + LeakyReLU.
    y = _conv_tile(x_ref[0], xh_ref[0], w_ref[...],
                   kernel_size=kernel_size, l_tile=l_tile)
    z = y * scale_ref[...] + shift_ref[...]                          # (C_out, l_tile) f32
    o_ref[...] = jnp.where(z >= 0, z, negative_slope * z)[None].astype(o_ref.dtype)


def _round_up(v, m):
    return (v + m - 1) // m * m


def _pick_l_tile(l_out, c_in_p, c_out, kernel_size):
    """Largest lane-dense tile whose per-step working set stays well inside VMEM."""
    budget = 24 * 1024 * 1024
    cap = max(128, min(2048, pl.next_power_of_2(max(l_out, 1))))
    for t in (2048, 1024, 512, 256, 128):
        if t > cap:
            continue
        slab = c_in_p * (t + _HALO) * 2                  # bf16 haloed slab
        col = kernel_size * c_in_p * t * 2               # bf16 im2col matmul operand
        ytile = 2 * c_out * t * 4                        # f32 conv tile + elementwise temp
        blocks = 2 * (c_in_p * (t + _HALO) * 2 + c_out * t * 4)   # double-buffered I/O blocks
        if slab + col + ytile + blocks <= budget:
            return t
    return 128


@functools.partial(jax.jit, static_argnames=("kernel_size", "padding", "eps", "negative_slope"))
def downsampling_layer(x, w, b, gamma, beta, *, kernel_size=15, padding=7,
                       eps=1e-5, negative_slope=0.1):
    """x: (N, C_in, L); w: (C_out, C_in, K); b/gamma/beta: (C_out,). stride=1, dilation=1."""
    del b   # Conv bias cancels exactly under training-mode BatchNorm (see header note).
    N, C_in, L = x.shape
    C_out = w.shape[0]
    L_out = L + 2 * padding - (kernel_size - 1)          # stride=1, dilation=1
    C_in_p = _round_up(C_in, 16)                         # bf16 sublane-packed im2col chunks
    L_tile = _pick_l_tile(L_out, C_in_p, C_out, kernel_size)
    n_lt = pl.cdiv(L_out, L_tile)
    L_in_p = n_lt * L_tile + _HALO                       # room for the last tile's halo block

    # TODO(synk): the conv padding could be applied with in-kernel masked taps to avoid this
    # one extra (bf16) HBM staging copy of the input.
    pad_right = L_in_p - padding - L
    x_pad = jnp.pad(x.astype(jnp.bfloat16),
                    ((0, 0), (0, C_in_p - C_in), (padding, pad_right)))

    # Fold the K taps into the matmul contraction: column index = k*C_in_p + c.
    w_p = jnp.pad(w.astype(jnp.float32), ((0, 0), (0, C_in_p - C_in), (0, 0)))
    w2d = jnp.transpose(w_p, (0, 2, 1)).reshape(C_out, kernel_size * C_in_p).astype(jnp.bfloat16)

    grid = (N, n_lt)
    halo_r = L_tile // _HALO
    x_spec = pl.BlockSpec((1, C_in_p, L_tile), lambda n, j: (n, 0, j))
    halo_spec = pl.BlockSpec((1, C_in_p, _HALO), lambda n, j: (n, 0, (j + 1) * halo_r))
    w_spec = pl.BlockSpec((C_out, kernel_size * C_in_p), lambda n, j: (0, 0))
    cparams = pltpu.CompilerParams(dimension_semantics=("parallel", "parallel"),
                                   vmem_limit_bytes=_VMEM_LIMIT)

    # ---- Pass 1: conv tiles (never stored) -> per-tile BN partial statistics ----
    stats = pl.pallas_call(
        functools.partial(_stats_kernel, kernel_size=kernel_size, l_tile=L_tile, l_out=L_out),
        grid=grid,
        in_specs=[x_spec, halo_spec, w_spec],
        out_specs=pl.BlockSpec((1, 1, C_out, 2), lambda n, j: (n, j, 0, 0)),
        out_shape=jax.ShapeDtypeStruct((N, n_lt, C_out, 2), jnp.float32),
        compiler_params=cparams,
    )(x_pad, x_pad, w2d)

    # ---- Finish BN batch statistics (tiny (C_out,) math) and fold into scale/shift ----
    cnt = float(N * L_out)
    mean = jnp.sum(stats[..., 0], axis=(0, 1)) / cnt
    var = jnp.maximum(jnp.sum(stats[..., 1], axis=(0, 1)) / cnt - mean * mean, 0.0)
    inv = lax.rsqrt(var + eps)
    scale = gamma.astype(jnp.float32) * inv
    shift = beta.astype(jnp.float32) - mean * scale

    # ---- Pass 2: recompute conv tile, fuse scale/shift + LeakyReLU, write final output ----
    out = pl.pallas_call(
        functools.partial(_conv_bn_act_kernel, kernel_size=kernel_size, l_tile=L_tile,
                          negative_slope=negative_slope),
        grid=grid,
        in_specs=[x_spec, halo_spec, w_spec,
                  pl.BlockSpec((C_out, 1), lambda n, j: (0, 0)),
                  pl.BlockSpec((C_out, 1), lambda n, j: (0, 0))],
        out_specs=pl.BlockSpec((1, C_out, L_tile), lambda n, j: (n, 0, j)),
        out_shape=jax.ShapeDtypeStruct((N, C_out, L_out), jnp.float32),
        compiler_params=cparams,
    )(x_pad, x_pad, w2d, scale.reshape(C_out, 1), shift.reshape(C_out, 1))

    return out


if __name__ == "__main__":
    key = jax.random.PRNGKey(0)
    k1, k2, k3, k4, k5 = jax.random.split(key, 5)

    N, C_in, C_out, L, K = 2, 4, 8, 16, 15
    x = jax.random.normal(k1, (N, C_in, L), jnp.float32)

    # Deterministic synthetic parameters (PyTorch-like uniform init for the conv).
    bound = 1.0 / np.sqrt(C_in * K)
    w = jax.random.uniform(k2, (C_out, C_in, K), jnp.float32, -bound, bound)
    b = jax.random.uniform(k3, (C_out,), jnp.float32, -bound, bound)
    gamma = jax.random.uniform(k4, (C_out,), jnp.float32, 0.5, 1.5)
    beta = jax.random.uniform(k5, (C_out,), jnp.float32, -0.5, 0.5)

    out = jax.block_until_ready(downsampling_layer(x, w, b, gamma, beta))

    # Pure-JAX reference (same semantics as the PyTorch module in training mode).
    # Conv operands rounded to bf16 to match the kernel's MXU operand precision
    # (accumulation is f32 in both; BN/LeakyReLU are f32 in both).
    xb = x.astype(jnp.bfloat16).astype(jnp.float32)
    wb = w.astype(jnp.bfloat16).astype(jnp.float32)
    y = lax.conv_general_dilated(xb, wb, (1,), [(7, 7)],
                                 dimension_numbers=("NCH", "OIH", "NCH"),
                                 precision=lax.Precision.HIGHEST,
                                 preferred_element_type=jnp.float32) + b[None, :, None]
    mean = y.mean(axis=(0, 2), keepdims=True)
    var = ((y - mean) ** 2).mean(axis=(0, 2), keepdims=True)
    y_hat = (y - mean) / jnp.sqrt(var + 1e-5) * gamma[None, :, None] + beta[None, :, None]
    ref = jnp.where(y_hat >= 0, y_hat, 0.1 * y_hat)

    np.testing.assert_allclose(np.asarray(out), np.asarray(ref), rtol=1e-3, atol=1e-3)
    print("KERNEL_OK")
</pallas_src>

<mosaic_0001>
module attributes {stable_mosaic.version = 11 : i64} {
  func.func @_stats_kernel(%arg0: i32, %arg1: i32, %arg2: memref<1x16x128xbf16, #tpu.memory_space<vmem>>, %arg3: memref<1x16x128xbf16, #tpu.memory_space<vmem>>, %arg4: memref<8x240xbf16, #tpu.memory_space<vmem>>, %arg5: memref<1x1x8x2xf32, #tpu.memory_space<vmem>>) attributes {dimension_semantics = [#tpu.dimension_semantics<parallel>, #tpu.dimension_semantics<parallel>], iteration_bounds = array<i64: 2, 1>, scalar_prefetch = 0 : i64, scratch_operands = 0 : i64, tpu.core_type = #tpu.core_type<tc>, window_params = [{transform_indices = @transform_0, window_bounds = array<i64: 1, 16, 128>}, {transform_indices = @transform_1, window_bounds = array<i64: 1, 16, 128>}, {pipeline_mode = #tpu.pipeline_mode<synchronous>, transform_indices = @transform_2, window_bounds = array<i64: 8, 240>}, {transform_indices = @transform_3, window_bounds = array<i64: 1, 1, 8, 2>}]} {
    %c0 = arith.constant 0 : index
    %c0_0 = arith.constant 0 : index
    %c0_1 = arith.constant 0 : index
    %0 = vector.load %arg2[%c0, %c0_0, %c0_1] : memref<1x16x128xbf16, #tpu.memory_space<vmem>>, vector<1x16x128xbf16>
    %1 = vector.shape_cast %0 : vector<1x16x128xbf16> to vector<16x128xbf16>
    %c0_2 = arith.constant 0 : index
    %c0_3 = arith.constant 0 : index
    %c0_4 = arith.constant 0 : index
    %2 = vector.load %arg3[%c0_2, %c0_3, %c0_4] : memref<1x16x128xbf16, #tpu.memory_space<vmem>>, vector<1x16x128xbf16>
    %3 = vector.shape_cast %2 : vector<1x16x128xbf16> to vector<16x128xbf16>
    %c0_5 = arith.constant 0 : index
    %c0_6 = arith.constant 0 : index
    %4 = vector.load %arg4[%c0_5, %c0_6] : memref<8x240xbf16, #tpu.memory_space<vmem>>, vector<8x240xbf16>
    %5 = tpu.concatenate %1, %3 in 1 : vector<16x128xbf16>, vector<16x128xbf16> -> vector<16x256xbf16>
    %6 = vector.extract_strided_slice %5 {offsets = [0, 0], sizes = [16, 128], strides = [1, 1]} : vector<16x256xbf16> to vector<16x128xbf16>
    %7 = vector.extract_strided_slice %5 {offsets = [0, 1], sizes = [16, 128], strides = [1, 1]} : vector<16x256xbf16> to vector<16x128xbf16>
    %8 = vector.extract_strided_slice %5 {offsets = [0, 2], sizes = [16, 128], strides = [1, 1]} : vector<16x256xbf16> to vector<16x128xbf16>
    %9 = vector.extract_strided_slice %5 {offsets = [0, 3], sizes = [16, 128], strides = [1, 1]} : vector<16x256xbf16> to vector<16x128xbf16>
    %10 = vector.extract_strided_slice %5 {offsets = [0, 4], sizes = [16, 128], strides = [1, 1]} : vector<16x256xbf16> to vector<16x128xbf16>
    %11 = vector.extract_strided_slice %5 {offsets = [0, 5], sizes = [16, 128], strides = [1, 1]} : vector<16x256xbf16> to vector<16x128xbf16>
    %12 = vector.extract_strided_slice %5 {offsets = [0, 6], sizes = [16, 128], strides = [1, 1]} : vector<16x256xbf16> to vector<16x128xbf16>
    %13 = vector.extract_strided_slice %5 {offsets = [0, 7], sizes = [16, 128], strides = [1, 1]} : vector<16x256xbf16> to vector<16x128xbf16>
    %14 = vector.extract_strided_slice %5 {offsets = [0, 8], sizes = [16, 128], strides = [1, 1]} : vector<16x256xbf16> to vector<16x128xbf16>
    %15 = vector.extract_strided_slice %5 {offsets = [0, 9], sizes = [16, 128], strides = [1, 1]} : vector<16x256xbf16> to vector<16x128xbf16>
    %16 = vector.extract_strided_slice %5 {offsets = [0, 10], sizes = [16, 128], strides = [1, 1]} : vector<16x256xbf16> to vector<16x128xbf16>
    %17 = vector.extract_strided_slice %5 {offsets = [0, 11], sizes = [16, 128], strides = [1, 1]} : vector<16x256xbf16> to vector<16x128xbf16>
    %18 = vector.extract_strided_slice %5 {offsets = [0, 12], sizes = [16, 128], strides = [1, 1]} : vector<16x256xbf16> to vector<16x128xbf16>
    %19 = vector.extract_strided_slice %5 {offsets = [0, 13], sizes = [16, 128], strides = [1, 1]} : vector<16x256xbf16> to vector<16x128xbf16>
    %20 = vector.extract_strided_slice %5 {offsets = [0, 14], sizes = [16, 128], strides = [1, 1]} : vector<16x256xbf16> to vector<16x128xbf16>
    %21 = tpu.concatenate %6, %7, %8, %9, %10, %11, %12, %13, %14, %15, %16, %17, %18, %19, %20 in 0 : vector<16x128xbf16>, vector<16x128xbf16>, vector<16x128xbf16>, vector<16x128xbf16>, vector<16x128xbf16>, vector<16x128xbf16>, vector<16x128xbf16>, vector<16x128xbf16>, vector<16x128xbf16>, vector<16x128xbf16>, vector<16x128xbf16>, vector<16x128xbf16>, vector<16x128xbf16>, vector<16x128xbf16>, vector<16x128xbf16> -> vector<240x128xbf16>
    %cst = arith.constant dense<0.000000e+00> : vector<8x128xf32>
    %22 = tpu.matmul %4, %21, %cst {dimension_numbers = #tpu.dot_dimension_numbers<[1], [0], [0], [1], [0, 0, 1, 1], [], []>} : vector<8x240xbf16>, vector<240x128xbf16>, vector<8x128xf32> -> vector<8x128xf32>
    %c0_i32 = arith.constant 0 : i32
    %23 = arith.cmpi slt, %arg1, %c0_i32 : i32
    %24 = arith.extui %23 : i1 to i32
    %c0_i32_7 = arith.constant 0 : i32
    %25 = arith.cmpi ne, %24, %c0_i32_7 : i32
    scf.if %25 {
      %cst_10 = arith.constant dense<0.000000e+00> : vector<8xf32>
      %29 = vector.multi_reduction <add>, %22, %cst_10 [1] : vector<8x128xf32> to vector<8xf32>
      %30 = vector.shape_cast %29 : vector<8xf32> to vector<8x1xf32>
      %31 = arith.mulf %22, %22 : vector<8x128xf32>
      %cst_11 = arith.constant dense<0.000000e+00> : vector<8xf32>
      %32 = vector.multi_reduction <add>, %31, %cst_11 [1] : vector<8x128xf32> to vector<8xf32>
      %33 = vector.shape_cast %32 : vector<8xf32> to vector<8x1xf32>
      %34 = tpu.concatenate %30, %33 in 1 : vector<8x1xf32>, vector<8x1xf32> -> vector<8x2xf32>
      %35 = vector.shape_cast %34 : vector<8x2xf32> to vector<1x1x8x2xf32>
      %c0_12 = arith.constant 0 : index
      %c0_13 = arith.constant 0 : index
      %c0_14 = arith.constant 0 : index
      %c0_15 = arith.constant 0 : index
      %36 = vector.load %arg5[%c0_12, %c0_13, %c0_14, %c0_15] : memref<1x1x8x2xf32, #tpu.memory_space<vmem>>, vector<1x1x8x2xf32>
      tpu.vector_store %arg5[%c0_12, %c0_13, %c0_14, %c0_15], %35 {strides = array<i32>} : memref<1x1x8x2xf32, #tpu.memory_space<vmem>>, vector<1x1x8x2xf32>,
    } else {
    }
    %c0_i32_8 = arith.constant 0 : i32
    %26 = arith.cmpi eq, %arg1, %c0_i32_8 : i32
    %27 = arith.extui %26 : i1 to i32
    %c0_i32_9 = arith.constant 0 : i32
    %28 = arith.cmpi ne, %27, %c0_i32_9 : i32
    scf.if %28 {
      %29 = tpu.iota {dimensions = array<i32: 1>} : vector<8x128xi32>
      %c128_i32 = arith.constant 128 : i32
      %30 = arith.muli %arg1, %c128_i32 : i32
      %c16_i32 = arith.constant 16 : i32
      %31 = arith.subi %c16_i32, %30 : i32
      %32 = vector.broadcast %31 : i32 to vector<8x128xi32>
      %33 = arith.cmpi slt, %29, %32 : vector<8x128xi32>
      %cst_10 = arith.constant 0.000000e+00 : f32
      %34 = vector.broadcast %cst_10 : f32 to vector<8x128xf32>
      %35 = arith.select %33, %22, %34 : vector<8x128xi1>, vector<8x128xf32>
      %cst_11 = arith.constant dense<0.000000e+00> : vector<8xf32>
      %36 = vector.multi_reduction <add>, %35, %cst_11 [1] : vector<8x128xf32> to vector<8xf32>
      %37 = vector.shape_cast %36 : vector<8xf32> to vector<8x1xf32>
      %38 = arith.mulf %35, %35 : vector<8x128xf32>
      %cst_12 = arith.constant dense<0.000000e+00> : vector<8xf32>
      %39 = vector.multi_reduction <add>, %38, %cst_12 [1] : vector<8x128xf32> to vector<8xf32>
      %40 = vector.shape_cast %39 : vector<8xf32> to vector<8x1xf32>
      %41 = tpu.concatenate %37, %40 in 1 : vector<8x1xf32>, vector<8x1xf32> -> vector<8x2xf32>
      %42 = vector.shape_cast %41 : vector<8x2xf32> to vector<1x1x8x2xf32>
      %c0_13 = arith.constant 0 : index
      %c0_14 = arith.constant 0 : index
      %c0_15 = arith.constant 0 : index
      %c0_16 = arith.constant 0 : index
      %43 = vector.load %arg5[%c0_13, %c0_14, %c0_15, %c0_16] : memref<1x1x8x2xf32, #tpu.memory_space<vmem>>, vector<1x1x8x2xf32>
      tpu.vector_store %arg5[%c0_13, %c0_14, %c0_15, %c0_16], %42 {strides = array<i32>} : memref<1x1x8x2xf32, #tpu.memory_space<vmem>>, vector<1x1x8x2xf32>,
    } else {
    }
    return
  }
  func.func @transform_0(%arg0: i32, %arg1: i32) -> (i32, i32, i32) {
    %c0_i32 = arith.constant 0 : i32
    %c0_i32_0 = arith.constant 0 : i32
    return %arg0, %c0_i32, %arg1 : i32, i32, i32
  }
  func.func @transform_1(%arg0: i32, %arg1: i32) -> (i32, i32, i32) {
    %c1_i32 = arith.constant 1 : i32
    %0 = arith.addi %arg1, %c1_i32 : i32
    %c1_i32_0 = arith.constant 1 : i32
    %1 = arith.muli %0, %c1_i32_0 : i32
    %c0_i32 = arith.constant 0 : i32
    %c0_i32_1 = arith.constant 0 : i32
    return %arg0, %c0_i32, %1 : i32, i32, i32
  }
  func.func @transform_2(%arg0: i32, %arg1: i32) -> (i32, i32) {
    %c0_i32 = arith.constant 0 : i32
    %c0_i32_0 = arith.constant 0 : i32
    %c0_i32_1 = arith.constant 0 : i32
    return %c0_i32, %c0_i32_0 : i32, i32
  }
  func.func @transform_3(%arg0: i32, %arg1: i32) -> (i32, i32, i32, i32) {
    %c0_i32 = arith.constant 0 : i32
    %c0_i32_0 = arith.constant 0 : i32
    %c0_i32_1 = arith.constant 0 : i32
    return %arg0, %arg1, %c0_i32, %c0_i32_0 : i32, i32, i32, i32
  }
}

module attributes {stable_mosaic.version = 11 : i64} {
  func.func @_conv_bn_act_kernel(%arg0: i32, %arg1: i32, %arg2: memref<1x16x128xbf16, #tpu.memory_space<vmem>>, %arg3: memref<1x16x128xbf16, #tpu.memory_space<vmem>>, %arg4: memref<8x240xbf16, #tpu.memory_space<vmem>>, %arg5: memref<8x1xf32, #tpu.memory_space<vmem>>, %arg6: memref<8x1xf32, #tpu.memory_space<vmem>>, %arg7: memref<1x8x128xf32, #tpu.memory_space<vmem>>) attributes {dimension_semantics = [#tpu.dimension_semantics<parallel>, #tpu.dimension_semantics<parallel>], iteration_bounds = array<i64: 2, 1>, scalar_prefetch = 0 : i64, scratch_operands = 0 : i64, tpu.core_type = #tpu.core_type<tc>, window_params = [{transform_indices = @transform_0, window_bounds = array<i64: 1, 16, 128>}, {transform_indices = @transform_1, window_bounds = array<i64: 1, 16, 128>}, {pipeline_mode = #tpu.pipeline_mode<synchronous>, transform_indices = @transform_2, window_bounds = array<i64: 8, 240>}, {pipeline_mode = #tpu.pipeline_mode<synchronous>, transform_indices = @transform_3, window_bounds = array<i64: 8, 1>}, {pipeline_mode = #tpu.pipeline_mode<synchronous>, transform_indices = @transform_4, window_bounds = array<i64: 8, 1>}, {transform_indices = @transform_5, window_bounds = array<i64: 1, 8, 128>}]} {
    %c0 = arith.constant 0 : index
    %c0_0 = arith.constant 0 : index
    %c0_1 = arith.constant 0 : index
    %0 = vector.load %arg2[%c0, %c0_0, %c0_1] : memref<1x16x128xbf16, #tpu.memory_space<vmem>>, vector<1x16x128xbf16>
    %1 = vector.shape_cast %0 : vector<1x16x128xbf16> to vector<16x128xbf16>
    %c0_2 = arith.constant 0 : index
    %c0_3 = arith.constant 0 : index
    %c0_4 = arith.constant 0 : index
    %2 = vector.load %arg3[%c0_2, %c0_3, %c0_4] : memref<1x16x128xbf16, #tpu.memory_space<vmem>>, vector<1x16x128xbf16>
    %3 = vector.shape_cast %2 : vector<1x16x128xbf16> to vector<16x128xbf16>
    %c0_5 = arith.constant 0 : index
    %c0_6 = arith.constant 0 : index
    %4 = vector.load %arg4[%c0_5, %c0_6] : memref<8x240xbf16, #tpu.memory_space<vmem>>, vector<8x240xbf16>
    %5 = tpu.concatenate %1, %3 in 1 : vector<16x128xbf16>, vector<16x128xbf16> -> vector<16x256xbf16>
    %6 = vector.extract_strided_slice %5 {offsets = [0, 0], sizes = [16, 128], strides = [1, 1]} : vector<16x256xbf16> to vector<16x128xbf16>
    %7 = vector.extract_strided_slice %5 {offsets = [0, 1], sizes = [16, 128], strides = [1, 1]} : vector<16x256xbf16> to vector<16x128xbf16>
    %8 = vector.extract_strided_slice %5 {offsets = [0, 2], sizes = [16, 128], strides = [1, 1]} : vector<16x256xbf16> to vector<16x128xbf16>
    %9 = vector.extract_strided_slice %5 {offsets = [0, 3], sizes = [16, 128], strides = [1, 1]} : vector<16x256xbf16> to vector<16x128xbf16>
    %10 = vector.extract_strided_slice %5 {offsets = [0, 4], sizes = [16, 128], strides = [1, 1]} : vector<16x256xbf16> to vector<16x128xbf16>
    %11 = vector.extract_strided_slice %5 {offsets = [0, 5], sizes = [16, 128], strides = [1, 1]} : vector<16x256xbf16> to vector<16x128xbf16>
    %12 = vector.extract_strided_slice %5 {offsets = [0, 6], sizes = [16, 128], strides = [1, 1]} : vector<16x256xbf16> to vector<16x128xbf16>
    %13 = vector.extract_strided_slice %5 {offsets = [0, 7], sizes = [16, 128], strides = [1, 1]} : vector<16x256xbf16> to vector<16x128xbf16>
    %14 = vector.extract_strided_slice %5 {offsets = [0, 8], sizes = [16, 128], strides = [1, 1]} : vector<16x256xbf16> to vector<16x128xbf16>
    %15 = vector.extract_strided_slice %5 {offsets = [0, 9], sizes = [16, 128], strides = [1, 1]} : vector<16x256xbf16> to vector<16x128xbf16>
    %16 = vector.extract_strided_slice %5 {offsets = [0, 10], sizes = [16, 128], strides = [1, 1]} : vector<16x256xbf16> to vector<16x128xbf16>
    %17 = vector.extract_strided_slice %5 {offsets = [0, 11], sizes = [16, 128], strides = [1, 1]} : vector<16x256xbf16> to vector<16x128xbf16>
    %18 = vector.extract_strided_slice %5 {offsets = [0, 12], sizes = [16, 128], strides = [1, 1]} : vector<16x256xbf16> to vector<16x128xbf16>
    %19 = vector.extract_strided_slice %5 {offsets = [0, 13], sizes = [16, 128], strides = [1, 1]} : vector<16x256xbf16> to vector<16x128xbf16>
    %20 = vector.extract_strided_slice %5 {offsets = [0, 14], sizes = [16, 128], strides = [1, 1]} : vector<16x256xbf16> to vector<16x128xbf16>
    %21 = tpu.concatenate %6, %7, %8, %9, %10, %11, %12, %13, %14, %15, %16, %17, %18, %19, %20 in 0 : vector<16x128xbf16>, vector<16x128xbf16>, vector<16x128xbf16>, vector<16x128xbf16>, vector<16x128xbf16>, vector<16x128xbf16>, vector<16x128xbf16>, vector<16x128xbf16>, vector<16x128xbf16>, vector<16x128xbf16>, vector<16x128xbf16>, vector<16x128xbf16>, vector<16x128xbf16>, vector<16x128xbf16>, vector<16x128xbf16> -> vector<240x128xbf16>
    %cst = arith.constant dense<0.000000e+00> : vector<8x128xf32>
    %22 = tpu.matmul %4, %21, %cst {dimension_numbers = #tpu.dot_dimension_numbers<[1], [0], [0], [1], [0, 0, 1, 1], [], []>} : vector<8x240xbf16>, vector<240x128xbf16>, vector<8x128xf32> -> vector<8x128xf32>
    %c0_7 = arith.constant 0 : index
    %c0_8 = arith.constant 0 : index
    %23 = vector.load %arg5[%c0_7, %c0_8] : memref<8x1xf32, #tpu.memory_space<vmem>>, vector<8x1xf32>
    %24 = vector.broadcast %23 : vector<8x1xf32> to vector<8x128xf32>
    %25 = arith.mulf %22, %24 : vector<8x128xf32>
    %c0_9 = arith.constant 0 : index
    %c0_10 = arith.constant 0 : index
    %26 = vector.load %arg6[%c0_9, %c0_10] : memref<8x1xf32, #tpu.memory_space<vmem>>, vector<8x1xf32>
    %27 = vector.broadcast %26 : vector<8x1xf32> to vector<8x128xf32>
    %28 = arith.addf %25, %27 : vector<8x128xf32>
    %cst_11 = arith.constant 0.000000e+00 : f32
    %29 = vector.broadcast %cst_11 : f32 to vector<8x128xf32>
    %30 = arith.cmpf oge, %28, %29 : vector<8x128xf32>
    %cst_12 = arith.constant 1.000000e-01 : f32
    %31 = vector.broadcast %cst_12 : f32 to vector<8x128xf32>
    %32 = arith.mulf %31, %28 : vector<8x128xf32>
    %33 = arith.select %30, %28, %32 : vector<8x128xi1>, vector<8x128xf32>
    %34 = vector.shape_cast %33 : vector<8x128xf32> to vector<1x8x128xf32>
    %c0_13 = arith.constant 0 : index
    %c0_14 = arith.constant 0 : index
    %c0_15 = arith.constant 0 : index
    %35 = vector.load %arg7[%c0_13, %c0_14, %c0_15] : memref<1x8x128xf32, #tpu.memory_space<vmem>>, vector<1x8x128xf32>
    tpu.vector_store %arg7[%c0_13, %c0_14, %c0_15], %34 {strides = array<i32>} : memref<1x8x128xf32, #tpu.memory_space<vmem>>, vector<1x8x128xf32>,
    return
  }
  func.func @transform_0(%arg0: i32, %arg1: i32) -> (i32, i32, i32) {
    %c0_i32 = arith.constant 0 : i32
    %c0_i32_0 = arith.constant 0 : i32
    return %arg0, %c0_i32, %arg1 : i32, i32, i32
  }
  func.func @transform_1(%arg0: i32, %arg1: i32) -> (i32, i32, i32) {
    %c1_i32 = arith.constant 1 : i32
    %0 = arith.addi %arg1, %c1_i32 : i32
    %c1_i32_0 = arith.constant 1 : i32
    %1 = arith.muli %0, %c1_i32_0 : i32
    %c0_i32 = arith.constant 0 : i32
    %c0_i32_1 = arith.constant 0 : i32
    return %arg0, %c0_i32, %1 : i32, i32, i32
  }
  func.func @transform_2(%arg0: i32, %arg1: i32) -> (i32, i32) {
    %c0_i32 = arith.constant 0 : i32
    %c0_i32_0 = arith.constant 0 : i32
    %c0_i32_1 = arith.constant 0 : i32
    return %c0_i32, %c0_i32_0 : i32, i32
  }
  func.func @transform_3(%arg0: i32, %arg1: i32) -> (i32, i32) {
    %c0_i32 = arith.constant 0 : i32
    %c0_i32_0 = arith.constant 0 : i32
    %c0_i32_1 = arith.constant 0 : i32
    return %c0_i32, %c0_i32_0 : i32, i32
  }
  func.func @transform_4(%arg0: i32, %arg1: i32) -> (i32, i32) {
    %c0_i32 = arith.constant 0 : i32
    %c0_i32_0 = arith.constant 0 : i32
    %c0_i32_1 = arith.constant 0 : i32
    return %c0_i32, %c0_i32_0 : i32, i32
  }
  func.func @transform_5(%arg0: i32, %arg1: i32) -> (i32, i32, i32) {
    %c0_i32 = arith.constant 0 : i32
    %c0_i32_0 = arith.constant 0 : i32
    return %arg0, %c0_i32, %arg1 : i32, i32, i32
  }
}

</mosaic_0001>

<bundles_post_ra>
// kernel: downsampling_layer.3
= control target key start
LH: loop header
LB: loop body
LE: loop exit
PB: predicated region body
PF: predicated region fallthrough
CT: control target
= control target key end

     0   :  { %10 = vsyncpa [#allocation5], 0  ;;  %s1027_s0 = inlined_call_operand.vmem [shape: bf16[2,16,256], index: 0, kind: input, shape index: {}, may-alias: {0,1}]   ;;  %s1028_s1 = inlined_call_operand.vmem [shape: bf16[2,16,256], index: 1, kind: input, shape index: {}, may-alias: {0,1}]   ;;  %s1029_s2 = inlined_call_operand.vmem [shape: bf16[8,240], index: 2, kind: input, shape index: {}]   ;;  %s1030_s3 = inlined_call_operand.vmem [shape: f32[8,1], index: 3, kind: input, shape index: {}]   ;;  %s1031_s4 = inlined_call_operand.vmem [shape: f32[8,1], index: 4, kind: input, shape index: {}]   ;;  %s1032_s5 = inlined_call_operand.hbm [shape: f32[2,8,16], index: 5, kind: output, shape index: {}]  }
   0x1   :  { %12 = vsyncpa [#allocation5 + $0x1], 0  ;;  %s877_s18 = smov 0   ;;  %s879_s19 = smov 0  }
   0x2   :  { %s881_s20 = smov 0   ;;  %s883_s21 = smov 0  }
   0x3   :  { %s885_s22 = smov 0   ;;  %s887_s23 = smov 0  }
   0x4 LB: > { %s646_s24 = sadd.s32 4294967295, %s830_s23   ;;  %s647_s25 = sadd.s32 4294967294, %s830_s23   ;;  %s830_s23 = sphi %s887_s23, %s18_s23   ;;  %s826_s22 = sphi %s885_s22, %s1040_s22   ;;  %s822_s21 = sphi %s883_s21, %s1039_s21   ;;  %s818_s20 = sphi %s881_s20, %s1038_s20   ;;  %s814_s19 = sphi %s879_s19, %s1037_s19   ;;  %s810_s18 = sphi %s877_s18, %s1036_s18  }
   0x5   : > { %s30_s26 = sadd.s32 1, %s826_s22  ;;  %s39_s27 = sadd.s32 1, %s818_s20 }
   0x6   : > { %p32_p0 = scmp.ge.s32.totalorder %s30_s26, 2  ;;  %p46_p1 = scmp.ne.s32.totalorder %s818_s20, %s814_s19 }
   0x7   : > { %p47_p2 = scmp.eq.s32.totalorder %s830_s23, 0  ;;  %p171_p3 = scmp.eq.s32.totalorder %s646_s24, 1 }
   0x8   : > { %s1042_s26 = smov (%p32_p0, %s30_s26), 0  ;;  %p176_p6 = scmp.ne.s32.totalorder %s814_s19, %s810_s18 }
   0x9   : > { %p916_p4 = por %p47_p2, %p46_p1  ;;  %p920_p5 = por %p171_p3, %p46_p1 }
   0xa   : > { %s34_s30 = ssub.s32 %s826_s22, %s1042_s26  ;;  %p177_p8 = scmp.eq.s32.totalorder %s647_s25, 1 }
   0xb   : > { %p37_p7 = scmp.eq.s32.totalorder %s34_s30, 0  ;;  %p649_p10 = scmp.ge.s32.totalorder %s830_s23, 2 }
   0xc   : > { %p931_p9 = por %p177_p8, %p176_p6 }
   0xd   : > { %s929_s6 = scalar_select %p37_p7, %s818_s20, %s39_s27  }
   0xe   : > { %202 = sbr.rel (%p649_p10) target bundleno = 31 (0x1f), region = 28 }
  0x13   : > { %205 = sbr.rel (!%p916_p4) target bundleno = 25 (0x19), region = 32  ;;  %s207_s8 = sand.u32 (%p916_p4), 1, %s818_s20  }
  0x14   : > { %s675_s9 = sshll.u32 (%p916_p4), %s826_s22, 4  ;;  %s650_s10 = sshll.u32 (%p916_p4), %s207_s8, 3 }
  0x15   : > { %s213_s13 = scalar_lea.vmem (%p916_p4), %s1027_s0, %s675_s9  ;;  %s209_s14 = scalar_lea.vmem (%p916_p4), [#allocation2], %s650_s10 }
  0x16   : > { %v230_v0 = vld [vmem:[%s213_s13] sm:$0xf] (%p916_p4)  ;;  %v232_v1 = vld [vmem:[%s213_s13 + $0x8] sm:$0xf] (%p916_p4) }
  0x17   : > { %231 = vst [vmem:[%s209_s14] sm:$0xf] (%p916_p4), %v230_v0 }
  0x18   : > { %233 = vst [vmem:[%s209_s14 + $0x4] sm:$0xf] %v232_v1 }
  0x19 PF: > { %261 = sbr.rel (!%p916_p4) target bundleno = 31 (0x1f), region = 73  ;;  %s263_s15 = sand.u32 (%p916_p4), 1, %s818_s20  }
  0x1a   : > { %s676_s16 = sshll.u32 (%p916_p4), %s826_s22, 4  ;;  %s653_s17 = sshll.u32 (%p916_p4), %s263_s15, 3 }
  0x1b   : > { %s581_s27 = scalar_lea.vmem (%p916_p4), %s1028_s1, %s676_s16  ;;  %s265_s30 = scalar_lea.vmem (%p916_p4), [#allocation3], %s653_s17 }
  0x1c   : > { %v656_v2 = vld [vmem:[%s581_s27 + $0x4] sm:$0xf] (%p916_p4)  ;;  %v657_v3 = vld [vmem:[%s581_s27 + $0xc] sm:$0xf] (%p916_p4) }
  0x1d   : > { %288 = vst [vmem:[%s265_s30] sm:$0xf] (%p916_p4), %v656_v2 }
  0x1e   : > { %290 = vst [vmem:[%s265_s30 + $0x4] sm:$0xf] %v657_v3 }
  0x1f PF: > { %p658_p11 = scmp.ge.s32.totalorder %s830_s23, 1  ;;  %p317_p12 = scmp.lt.s32.totalorder %s830_s23, 3 }
  0x21   : > { %p318_p13 = pnand %p658_p11, %p317_p12 }
  0x22   : > { %s324_s28 = sand.u32 (!%p318_p13), 1, %s814_s19   ;;  %s832_s10 = smov (!%p318_p13), 122  }
  0x23   : > { %321 = sbr.rel (%p318_p13) target bundleno = 370 (0x172), region = 114  ;;  %s957_s8 = sshll.u32 (!%p318_p13), %s324_s28, 3 }
  0x24   : > { %s326_s9 = scalar_lea.vmem (!%p318_p13), [#allocation2], %s957_s8  ;;  %s833_s11 = smov (!%p318_p13), 121  }
  0x25   : > { %s834_s12 = smov (!%p318_p13), 114   ;;  %s333_s13 = scalar_lea.vmem (!%p318_p13), [#allocation3], %s957_s8 }
  0x26   : > { %s835_s14 = smov (!%p318_p13), 123   ;;  %s836_s15 = smov (!%p318_p13), 115  }
  0x27   : > { %s837_s16 = smov (!%p318_p13), 124   ;;  %s838_s17 = smov (!%p318_p13), 116  }
  0x28   : > { %v960_v4 = vld [vmem:[%s326_s9] sm:$0xff]  ;;  %v678_v5 = vld [vmem:[%s333_s13] sm:$0xff]  ;;  %s839_s24 = smov 125   ;;  %s840_s25 = smov 117   ;;  %vm475_vm0 = vcmask 932864   ;;  %vm426_vm1 = vcmask 990208  }
  0x29   : > { %415 = vrot.lane.b32.xlu1 %v960_v4, %s832_s10  ;;  %422 = vrot.lane.b32.xlu0 %v960_v4, %s833_s11  ;;  %s841_s27 = smov 126   ;;  %s842_s30 = smov 118   ;;  %vm419_vm2 = vcmask 998400   ;;  %vm412_vm3 = vcmask 1006592   ;;  %vm468_vm4 = vcmask 941056   ;;  %vm405_vm5 = vcmask 1014784  }
  0x2a   : > { %471 = vrot.lane.b32.xlu2 %v960_v4, %s834_s12  ;;  %s843_s9 = smov 127   ;;  %vm461_vm6 = vcmask 949248   ;;  %vm398_vm7 = vcmask 1022976   ;;  %vm454_vm8 = vcmask 957440   ;;  %v514_v34 = vld [vmem:[%s1030_s3] sm:$0xff]  ;;  %vm391_vm9 = vcmask 1031168  }
  0x2b   : > { %v521_v35 = vld [vmem:[%s1031_s4] sm:$0xff]  ;;  %v846_v36 = vmov 0   ;;  %vm447_vm10 = vcmask 965632   ;;  %vm384_vm11 = vcmask 1039360   ;;  %vm440_vm12 = vcmask 973824  }
  0x2c   : > { %749 = vset.pattern.permute.xlu1 %v846_v36  ;;  %750 = vset.pattern.permute.xlu2 %v846_v36  ;;  %v368_v41 = vld [vmem:[%s1029_s2] sm:$0xff]  ;;  %vm433_vm13 = vcmask 982016   ;;  %vm484_vm14 = vcmask 916480  }
  0x2d   : > { %751 = vset.pattern.permute.xlu0 %v846_v36  ;;  %v479_v46 = vunpack.c.l.b16 %v368_v41  ;;  %v480_v51 = vunpack.c.h.b16 %v368_v41 }
  0x2f   : > { %v481_v47 = vpack.c.b16 %v479_v46, %v479_v46  ;;  %v482_v55 = vpack.c.b16 %v480_v51, %v480_v51 }
  0x31   : > { %417 = vrot.lane.b32.xlu1 %v678_v5, %s832_s10  ;;  %424 = vrot.lane.b32.xlu0 %v678_v5, %s833_s11  ;;  %s844_s10 = smov 119   ;;  %s845_s11 = smov 120  }
  0x32   : > { %473 = vrot.lane.b32.xlu2 %v678_v5, %s834_s12 }
  0x39   : > { %410 = vrot.lane.b32.xlu1 %v678_v5, %s835_s14  ;;  %408 = vrot.lane.b32.xlu0 %v960_v4, %s835_s14 }
  0x3a   : > { %464 = vrot.lane.b32.xlu2 %v960_v4, %s836_s15 }
  0x41   : > { %401 = vrot.lane.b32.xlu1 %v960_v4, %s837_s16  ;;  %466 = vrot.lane.b32.xlu0 %v678_v5, %s836_s15  ;;  %s772_s15 = scalar_lea.hbm %s1032_s5, 16 }
  0x42   : > { %403 = vrot.lane.b32.xlu2 %v678_v5, %s837_s16 }
  0x49   : > { %459 = vrot.lane.b32.xlu1 %v678_v5, %s838_s17  ;;  %457 = vrot.lane.b32.xlu0 %v960_v4, %s838_s17 }
  0x4a   : > { %394 = vrot.lane.b32.xlu2 %v960_v4, %s839_s24 }
  0x51   : > { %450 = vrot.lane.b32.xlu1 %v960_v4, %s840_s25  ;;  %396 = vrot.lane.b32.xlu0 %v678_v5, %s839_s24  ;;  %s672_s24 = sshll.u32 %s822_s21, 3  ;;  %s533_s21 = scalar_lea.sflag [#allocation5], %s324_s28 }
  0x52   : > { %452 = vrot.lane.b32.xlu2 %v678_v5, %s840_s25 }
  0x59   : > { %389 = vrot.lane.b32.xlu1 %v678_v5, %s841_s27  ;;  %387 = vrot.lane.b32.xlu0 %v960_v4, %s841_s27 }
  0x5a   : > { %443 = vrot.lane.b32.xlu2 %v960_v4, %s842_s30 }
  0x61   : > { %380 = vrot.lane.b32.xlu1 %v960_v4, %s843_s9  ;;  %445 = vrot.lane.b32.xlu0 %v678_v5, %s842_s30  ;;  %s544_s30 = scalar_lea.hbm %s1032_s5, %s672_s24 }
  0x62   : > { %382 = vrot.lane.b32.xlu2 %v678_v5, %s843_s9  ;;  %s361_s9 = scalar_lea.vmem [#allocation4], %s957_s8 }
  0x69   : > { %438 = vrot.lane.b32.xlu1 %v678_v5, %s844_s10  ;;  %436 = vrot.lane.b32.xlu0 %v960_v4, %s844_s10  ;;  %s546_s10 = sshll.u32 %s361_s9, 4  ;;  %s547_s10 = int_to_ptr.vmem [resolvable:$true] %s546_s10 }
  0x6a   : > { %429 = vrot.lane.b32.xlu2 %v960_v4, %s845_s11 }
  0x71   : > { %431 = vrot.lane.b32.xlu0 %v678_v5, %s845_s11  ;;  %517 = vperm.xlu1 %749, %v514_v34   ;;  %s548_s11 = sshll.u32 %s544_s30, 4  ;;  %s549_s11 = int_to_ptr.hbm [resolvable:$true] %s548_s11 }
  0x72   : > { %524 = vperm.xlu2 %750, %v521_v35   ;;  %s766_s12 = sshra.s32 %s549_s11, 4  ;;  %s767_s12 = int_to_ptr.hbm [resolvable:$true] %s766_s12 }
  0x73   : > { %s768_s13 = scalar_lea.hbm %s767_s12, 8  ;;  %p773_p3 = scmp.lt.s32.totalorder %s767_s12, %s1032_s5 }
  0x74   : > { %p769_p0 = scmp.ne.s32.totalorder %s767_s12, %s768_s13  ;;  %p774_p4 = scmp.lt.s32.totalorder %s772_s15, %s768_s13 }
  0x76   : > { %p770_p1 = pnand %p769_p0, %p920_p5  ;;  %p775_p6 = por %p774_p4, %p773_p3 }
  0x78   : > { %p771_p2 = pneg %p770_p1 }
  0x7a   : > { %p776_p7 = pnand %p775_p6, %p771_p2 }
  0x84   : > { %v472_v6 = vpop.permute.xlu2 %471 }
  0x8c   : > { %v474_v7 = vpop.permute.xlu2 %473 }
  0x8d   : > { %v476_v8 = vsel %vm475_vm0, %v472_v6, %v474_v7 }
  0x8e   : > { %502 = vmatpush.bf16.msra.mxu1 %v476_v8 }
  0x94   : > { %v465_v11 = vpop.permute.xlu2 %464 }
  0x9b   : > { %v416_v9 = vpop.permute.xlu1 %415  ;;  %v423_v10 = vpop.permute.xlu0 %422 }
  0x9c   : > { %v404_v16 = vpop.permute.xlu2 %403 }
  0xa3   : > { %v418_v12 = vpop.permute.xlu1 %417  ;;  %v425_v13 = vpop.permute.xlu0 %424 }
  0xa4   : > { %v427_v14 = vsel %vm426_vm1, %v423_v10, %v425_v13  ;;  %v420_v15 = vsel %vm419_vm2, %v416_v9, %v418_v12  ;;  %v395_v20 = vpop.permute.xlu2 %394 }
  0xa5   : > { %488 = vmatpush.bf16.msra.mxu0 %v427_v14 }
  0xa9   : > { %489 = vmatpush.bf16.msra.mxu0 %v420_v15 }
  0xab   : > { %v411_v17 = vpop.permute.xlu1 %410  ;;  %v409_v18 = vpop.permute.xlu0 %408 }
  0xac   : > { %v413_v19 = vsel %vm412_vm3, %v409_v18, %v411_v17  ;;  %v453_v28 = vpop.permute.xlu2 %452 }
  0xad   : > { %490 = vmatpush.bf16.msra.mxu0 %v413_v19 }
  0xb3   : > { %v402_v21 = vpop.permute.xlu1 %401  ;;  %v467_v22 = vpop.permute.xlu0 %466 }
  0xb4   : > { %v469_v23 = vsel %vm468_vm4, %v465_v11, %v467_v22  ;;  %v406_v24 = vsel %vm405_vm5, %v402_v21, %v404_v16  ;;  %v444_v33 = vpop.permute.xlu2 %443 }
  0xb5   : > { %503 = vmatpush.bf16.msra.mxu1 %v469_v23  ;;  %491 = vmatpush.bf16.msra.mxu0 %v406_v24 }
  0xbb   : > { %v460_v25 = vpop.permute.xlu1 %459  ;;  %v458_v26 = vpop.permute.xlu0 %457 }
  0xbc   : > { %v462_v27 = vsel %vm461_vm6, %v458_v26, %v460_v25  ;;  %v383_v40 = vpop.permute.xlu2 %382 }
  0xbd   : > { %504 = vmatpush.bf16.msra.mxu1 %v462_v27 }
  0xc3   : > { %v451_v29 = vpop.permute.xlu1 %450  ;;  %v397_v30 = vpop.permute.xlu0 %396 }
  0xc4   : > { %v399_v31 = vsel %vm398_vm7, %v395_v20, %v397_v30  ;;  %v455_v32 = vsel %vm454_vm8, %v451_v29, %v453_v28  ;;  %v430_v52 = vpop.permute.xlu2 %429 }
  0xc5   : > { %492 = vmatpush.bf16.msra.mxu0 %v399_v31  ;;  %505 = vmatpush.bf16.msra.mxu1 %v455_v32 }
  0xcb   : > { %v390_v37 = vpop.permute.xlu1 %389  ;;  %v388_v38 = vpop.permute.xlu0 %387 }
  0xcc   : > { %v392_v39 = vsel %vm391_vm9, %v388_v38, %v390_v37  ;;  %v525_v61 = vpop.permute.xlu2 %524 }
  0xcd   : > { %493 = vmatpush.bf16.msra.mxu0 %v392_v39 }
  0xd3   : > { %v381_v42 = vpop.permute.xlu1 %380  ;;  %v446_v43 = vpop.permute.xlu0 %445 }
  0xd4   : > { %v448_v44 = vsel %vm447_vm10, %v444_v33, %v446_v43  ;;  %v385_v45 = vsel %vm384_vm11, %v381_v42, %v383_v40 }
  0xd5   : > { %506 = vmatpush.bf16.msra.mxu1 %v448_v44  ;;  %494 = vmatpush.bf16.msra.mxu0 %v385_v45 }
  0xd9   : > { %495 = vmatpush.bf16.msra.mxu0 %v960_v4 }
  0xdb   : > { %v439_v48 = vpop.permute.xlu1 %438  ;;  %v437_v49 = vpop.permute.xlu0 %436 }
  0xdc   : > { %v441_v50 = vsel %vm440_vm12, %v437_v49, %v439_v48  ;;  %496 = vmatmul.bf16.vlgmr.msra.gmra.mxu0 %v481_v47 }
  0xdd   : > { %507 = vmatpush.bf16.msra.mxu1 %v441_v50 }
  0xe3   : > { %v432_v53 = vpop.permute.xlu0 %431  ;;  %v518_v59 = vpop.permute.xlu1 %517 }
  0xe4   : > { %v434_v54 = vsel %vm433_vm13, %v430_v52, %v432_v53 }
  0xe5   : > { %508 = vmatpush.bf16.msra.mxu1 %v434_v54 }
  0xe8   : > { %670 = vmatmul.msk.bf16.vlgmr.msra.gmra.mxu1 %vm484_vm14, %v482_v55 }
 0x159   : > { %v497_v56 = vpop.f32.mrf.mxu0 }
 0x161   : > { %v499_v57 = vpop.f32.mrf.mxu0 }
 0x165   : > { %v510_v58 = vpop.f32.mrf.mxu1 }
 0x166   : > { %v511_v60 = vadd.f32 %v510_v58, %v497_v56 }
 0x168   : > { %v520_v62 = vmul.f32 %v518_v59, %v511_v60 }
 0x16a   : > { %v527_v63 = vadd.f32 %v525_v61, %v520_v62 }
 0x16c   : > { %vm528_vm15 = vcmp.ge.f32.partialorder %v527_v63, 0.0  ;;  %v529_v0 = vmul.f32 0.1, %v527_v63 }
 0x16d   : > { %v512_v1 = vpop.f32.mrf.mxu1 }
 0x16e   : > { %v530_v2 = vsel %vm528_vm15, %v527_v63, %v529_v0 }
 0x16f   : > { %531 = vst [vmem:[%s361_s9] sm:$0xff] %v530_v2 }
 0x170   : > { %779 = shalt.err (!%p776_p7)
}
 0x171   : > { %679 = dma.vmem_to_hbm [thread:$0]  (%p920_p5), %s547_s10, 128, %s549_s11, %s533_s21  }
 0x172 PF: > { %s560_s28 = sand.u32 1, %s810_s18   ;;  %p682_p8 = pnand %p649_p10, %p931_p9 }
 0x173   : > { %s561_s24 = scalar_lea.sflag [#allocation5], %s560_s28 }
 0x174   : > { %p683_p11 = pneg %p682_p8 }
 0x176   : > { %805 = dma.done.wait (%p683_p11), %s561_s24, 128  }
 0x177   : > { %807 = vsyncadd (%p683_p11), %s561_s24, 4294967168  ;;  %s18_s23 = sadd.s32 1, %s830_s23   ;;  %s1036_s18 = smov %s814_s19 }
 0x178   : > { %p15_p12 = scmp.ge.s32.totalorder %s18_s23, 4   ;;  %s1037_s19 = smov %s818_s20 }
 0x179   : > { %s1038_s20 = smov %s929_s6  ;;  %s1039_s21 = smov %s826_s22 }
 0x17a   : > { %s1040_s22 = smov %s1042_s26  ;;  %17 = sbr.rel (!%p15_p12) target bundleno = 4 (0x4), region = 170 }
 0x17f   :  { %567 = vsyncpa [#allocation5], 1 }
 0x180   :  { %569 = vsyncpa [#allocation5 + $0x1], 1 }

// kernel: downsampling_layer.2
= control target key start
LH: loop header
LB: loop body
LE: loop exit
PB: predicated region body
PF: predicated region fallthrough
CT: control target
= control target key end

     0   :  { %s758_s12 = smov 0   ;;  %s760_s13 = smov 0   ;;  %s857_s0 = inlined_call_operand.vmem [shape: bf16[2,16,256], index: 0, kind: input, shape index: {}, may-alias: {0,1}]   ;;  %s858_s1 = inlined_call_operand.vmem [shape: bf16[2,16,256], index: 1, kind: input, shape index: {}, may-alias: {0,1}]   ;;  %s859_s2 = inlined_call_operand.vmem [shape: bf16[8,240], index: 2, kind: input, shape index: {}]   ;;  %s860_s3 = inlined_call_operand.vmem [shape: f32[2,1,8,2], index: 3, kind: output, shape index: {}]  }
   0x1   :  { %s762_s14 = smov 0   ;;  %s764_s15 = smov 0  }
   0x2   :  { %s766_s16 = smov 0  }
   0x3 LB: > { %s25_s17 = sadd.s32 1, %s718_s15  ;;  %p41_p1 = scmp.ne.s32.totalorder %s710_s13, %s706_s12  ;;  %s722_s16 = sphi %s766_s16, %s13_s16   ;;  %s718_s15 = sphi %s764_s15, %s865_s15   ;;  %s714_s14 = sphi %s762_s14, %s864_s14   ;;  %s710_s13 = sphi %s760_s13, %s863_s13   ;;  %s706_s12 = sphi %s758_s12, %s862_s12  }
   0x4   : > { %p27_p0 = scmp.ge.s32.totalorder %s25_s17, 2  ;;  %p42_p2 = scmp.eq.s32.totalorder %s722_s16, 0 }
   0x5   : > { %s34_s20 = sadd.s32 1, %s710_s13  ;;  %p602_p5 = scmp.ge.s32.totalorder %s722_s16, 2 }
   0x6   : > { %s867_s17 = smov (%p27_p0, %s25_s17), 0  ;;  %p789_p3 = por %p42_p2, %p41_p1 }
   0x7   : > { %s29_s19 = ssub.s32 %s718_s15, %s867_s17  ;;  %149 = sbr.rel (%p602_p5) target bundleno = 24 (0x18), region = 20 }
   0x8   : > { %p32_p4 = scmp.eq.s32.totalorder %s29_s19, 0 }
   0xa   : > { %s797_s21 = scalar_select %p32_p4, %s710_s13, %s34_s20  }
   0xc   : > { %152 = sbr.rel (!%p789_p3) target bundleno = 18 (0x12), region = 24  ;;  %s154_s22 = sand.u32 (%p789_p3), 1, %s710_s13  }
   0xd   : > { %s626_s23 = sshll.u32 (%p789_p3), %s718_s15, 4  ;;  %s603_s24 = sshll.u32 (%p789_p3), %s154_s22, 3 }
   0xe   : > { %s160_s27 = scalar_lea.vmem (%p789_p3), %s857_s0, %s626_s23  ;;  %s156_s28 = scalar_lea.vmem (%p789_p3), [#allocation2], %s603_s24 }
   0xf   : > { %v177_v0 = vld [vmem:[%s160_s27] sm:$0xf] (%p789_p3)  ;;  %v179_v1 = vld [vmem:[%s160_s27 + $0x8] sm:$0xf] (%p789_p3) }
  0x10   : > { %178 = vst [vmem:[%s156_s28] sm:$0xf] (%p789_p3), %v177_v0 }
  0x11   : > { %180 = vst [vmem:[%s156_s28 + $0x4] sm:$0xf] %v179_v1 }
  0x12 PF: > { %208 = sbr.rel (!%p789_p3) target bundleno = 24 (0x18), region = 65  ;;  %s210_s29 = sand.u32 (%p789_p3), 1, %s710_s13  }
  0x13   : > { %s627_s30 = sshll.u32 (%p789_p3), %s718_s15, 4  ;;  %s606_s4 = sshll.u32 (%p789_p3), %s210_s29, 3 }
  0x14   : > { %s535_s7 = scalar_lea.vmem (%p789_p3), %s858_s1, %s627_s30  ;;  %s212_s8 = scalar_lea.vmem (%p789_p3), [#allocation3], %s606_s4 }
  0x15   : > { %v609_v2 = vld [vmem:[%s535_s7 + $0x4] sm:$0xf] (%p789_p3)  ;;  %v610_v3 = vld [vmem:[%s535_s7 + $0xc] sm:$0xf] (%p789_p3) }
  0x16   : > { %235 = vst [vmem:[%s212_s8] sm:$0xf] (%p789_p3), %v609_v2 }
  0x17   : > { %237 = vst [vmem:[%s212_s8 + $0x4] sm:$0xf] %v610_v3 }
  0x18 PF: > { %p611_p6 = scmp.ge.s32.totalorder %s722_s16, 1  ;;  %p264_p7 = scmp.lt.s32.totalorder %s722_s16, 3 }
  0x1a   : > { %p265_p8 = pnand %p611_p6, %p264_p7 }
  0x1b   : > { %s271_s9 = sand.u32 (!%p265_p8), 1, %s706_s12   ;;  %s724_s18 = smov (!%p265_p8), 122  }
  0x1c   : > { %268 = sbr.rel (%p265_p8) target bundleno = 474 (0x1da), region = 106  ;;  %s612_s10 = sshll.u32 (!%p265_p8), %s271_s9, 3 }
  0x1d   : > { %s273_s11 = scalar_lea.vmem (!%p265_p8), [#allocation2], %s612_s10  ;;  %s725_s19 = smov (!%p265_p8), 121  }
  0x1e   : > { %s726_s20 = smov (!%p265_p8), 114   ;;  %s280_s22 = scalar_lea.vmem (!%p265_p8), [#allocation3], %s612_s10 }
  0x1f   : > { %s727_s23 = smov (!%p265_p8), 123   ;;  %s728_s12 = smov (!%p265_p8), 115  }
  0x20   : > { %s729_s24 = smov (!%p265_p8), 124   ;;  %s730_s25 = smov (!%p265_p8), 116  }
  0x21   : > { %v817_v4 = vld [vmem:[%s273_s11] sm:$0xff]  ;;  %v629_v5 = vld [vmem:[%s280_s22] sm:$0xff]  ;;  %s731_s26 = smov 125   ;;  %s732_s27 = smov 117   ;;  %vm427_vm0 = vcmask 932864   ;;  %vm378_vm1 = vcmask 990208   ;;  %v483_v54 = vlaneseq }
  0x22   : > { %367 = vrot.lane.b32.xlu1 %v817_v4, %s724_s18  ;;  %374 = vrot.lane.b32.xlu0 %v817_v4, %s725_s19  ;;  %s733_s28 = smov 126   ;;  %s734_s29 = smov 118   ;;  %vm371_vm2 = vcmask 998400   ;;  %vm364_vm3 = vcmask 1006592   ;;  %vm420_vm4 = vcmask 941056   ;;  %vm357_vm5 = vcmask 1014784  }
  0x23   : > { %423 = vrot.lane.b32.xlu2 %v817_v4, %s726_s20  ;;  %s735_s30 = smov 127   ;;  %s736_s4 = smov 119   ;;  %vm413_vm6 = vcmask 949248   ;;  %vm350_vm7 = vcmask 1022976   ;;  %vm406_vm8 = vcmask 957440   ;;  %vm343_vm9 = vcmask 1031168  }
  0x24   : > { %s737_s5 = smov 120   ;;  %vm399_vm10 = vcmask 965632   ;;  %vm336_vm11 = vcmask 1039360   ;;  %v320_v38 = vld [vmem:[%s859_s2] sm:$0xff]  ;;  %vm392_vm12 = vcmask 973824   ;;  %vm385_vm13 = vcmask 982016  }
  0x25   : > { %v431_v43 = vunpack.c.l.b16 %v320_v38  ;;  %v432_v48 = vunpack.c.h.b16 %v320_v38  ;;  %vm436_vm14 = vcmask 916480   ;;  %v484_v56 = vand.u32 127, %v483_v54  ;;  %p308_p9 = scmp.lt.s32.totalorder %s714_s14, 1 }
  0x27   : > { %v433_v44 = vpack.c.b16 %v431_v43, %v431_v43  ;;  %v434_v52 = vpack.c.b16 %v432_v48, %v432_v48  ;;  %vm488_vm15 = vcmp.lt.s32.totalorder %v484_v56, 16  ;;  %s869_s14 = smov (!%p308_p9, %s714_s14), 1 }
  0x28   : > { %s614_s8 = sshll.u32 %s869_s14, 3 }
  0x29   : > { %s314_s11 = scalar_lea.vmem %s860_s3, %s614_s8 }
  0x2a   : > { %369 = vrot.lane.b32.xlu1 %v629_v5, %s724_s18  ;;  %376 = vrot.lane.b32.xlu0 %v629_v5, %s725_s19 }
  0x2b   : > { %425 = vrot.lane.b32.xlu2 %v629_v5, %s726_s20 }
  0x32   : > { %362 = vrot.lane.b32.xlu1 %v629_v5, %s727_s23  ;;  %360 = vrot.lane.b32.xlu0 %v817_v4, %s727_s23 }
  0x33   : > { %416 = vrot.lane.b32.xlu2 %v817_v4, %s728_s12 }
  0x3a   : > { %353 = vrot.lane.b32.xlu1 %v817_v4, %s729_s24  ;;  %418 = vrot.lane.b32.xlu0 %v629_v5, %s728_s12 }
  0x3b   : > { %355 = vrot.lane.b32.xlu2 %v629_v5, %s729_s24 }
  0x42   : > { %411 = vrot.lane.b32.xlu1 %v629_v5, %s730_s25  ;;  %409 = vrot.lane.b32.xlu0 %v817_v4, %s730_s25 }
  0x43   : > { %346 = vrot.lane.b32.xlu2 %v817_v4, %s731_s26 }
  0x4a   : > { %402 = vrot.lane.b32.xlu1 %v817_v4, %s732_s27  ;;  %348 = vrot.lane.b32.xlu0 %v629_v5, %s731_s26 }
  0x4b   : > { %404 = vrot.lane.b32.xlu2 %v629_v5, %s732_s27 }
  0x52   : > { %341 = vrot.lane.b32.xlu1 %v629_v5, %s733_s28  ;;  %339 = vrot.lane.b32.xlu0 %v817_v4, %s733_s28 }
  0x53   : > { %395 = vrot.lane.b32.xlu2 %v817_v4, %s734_s29 }
  0x5a   : > { %332 = vrot.lane.b32.xlu1 %v817_v4, %s735_s30  ;;  %397 = vrot.lane.b32.xlu0 %v629_v5, %s734_s29 }
  0x5b   : > { %334 = vrot.lane.b32.xlu2 %v629_v5, %s735_s30 }
  0x62   : > { %390 = vrot.lane.b32.xlu1 %v629_v5, %s736_s4  ;;  %388 = vrot.lane.b32.xlu0 %v817_v4, %s736_s4 }
  0x63   : > { %381 = vrot.lane.b32.xlu2 %v817_v4, %s737_s5 }
  0x6a   : > { %383 = vrot.lane.b32.xlu0 %v629_v5, %s737_s5 }
  0x7d   : > { %v424_v6 = vpop.permute.xlu2 %423 }
  0x85   : > { %v426_v7 = vpop.permute.xlu2 %425 }
  0x86   : > { %v428_v8 = vsel %vm427_vm0, %v424_v6, %v426_v7  ;;  %vm495_vm0 = vcmask 7168  }
  0x87   : > { %454 = vmatpush.bf16.msra.mxu1 %v428_v8 }
  0x8d   : > { %v417_v11 = vpop.permute.xlu2 %416 }
  0x94   : > { %v368_v9 = vpop.permute.xlu1 %367  ;;  %v375_v10 = vpop.permute.xlu0 %374 }
  0x95   : > { %v356_v16 = vpop.permute.xlu2 %355 }
  0x9c   : > { %v370_v12 = vpop.permute.xlu1 %369  ;;  %v377_v13 = vpop.permute.xlu0 %376 }
  0x9d   : > { %v379_v14 = vsel %vm378_vm1, %v375_v10, %v377_v13  ;;  %v372_v15 = vsel %vm371_vm2, %v368_v9, %v370_v12  ;;  %v347_v20 = vpop.permute.xlu2 %346  ;;  %vm497_vm1 = vcmask 15360  }
  0x9e   : > { %440 = vmatpush.bf16.msra.mxu0 %v379_v14 }
  0xa2   : > { %441 = vmatpush.bf16.msra.mxu0 %v372_v15 }
  0xa4   : > { %v363_v17 = vpop.permute.xlu1 %362  ;;  %v361_v18 = vpop.permute.xlu0 %360 }
  0xa5   : > { %v365_v19 = vsel %vm364_vm3, %v361_v18, %v363_v17  ;;  %v405_v28 = vpop.permute.xlu2 %404 }
  0xa6   : > { %442 = vmatpush.bf16.msra.mxu0 %v365_v19 }
  0xac   : > { %v354_v21 = vpop.permute.xlu1 %353  ;;  %v419_v22 = vpop.permute.xlu0 %418 }
  0xad   : > { %v421_v23 = vsel %vm420_vm4, %v417_v11, %v419_v22  ;;  %v358_v24 = vsel %vm357_vm5, %v354_v21, %v356_v16  ;;  %v396_v33 = vpop.permute.xlu2 %395 }
  0xae   : > { %455 = vmatpush.bf16.msra.mxu1 %v421_v23  ;;  %443 = vmatpush.bf16.msra.mxu0 %v358_v24 }
  0xb4   : > { %v412_v25 = vpop.permute.xlu1 %411  ;;  %v410_v26 = vpop.permute.xlu0 %409 }
  0xb5   : > { %v414_v27 = vsel %vm413_vm6, %v410_v26, %v412_v25  ;;  %v335_v37 = vpop.permute.xlu2 %334 }
  0xb6   : > { %456 = vmatpush.bf16.msra.mxu1 %v414_v27 }
  0xbc   : > { %v403_v29 = vpop.permute.xlu1 %402  ;;  %v349_v30 = vpop.permute.xlu0 %348 }
  0xbd   : > { %v351_v31 = vsel %vm350_vm7, %v347_v20, %v349_v30  ;;  %v407_v32 = vsel %vm406_vm8, %v403_v29, %v405_v28  ;;  %v382_v49 = vpop.permute.xlu2 %381 }
  0xbe   : > { %444 = vmatpush.bf16.msra.mxu0 %v351_v31  ;;  %457 = vmatpush.bf16.msra.mxu1 %v407_v32 }
  0xc4   : > { %v342_v34 = vpop.permute.xlu1 %341  ;;  %v340_v35 = vpop.permute.xlu0 %339 }
  0xc5   : > { %v344_v36 = vsel %vm343_vm9, %v340_v35, %v342_v34 }
  0xc6   : > { %445 = vmatpush.bf16.msra.mxu0 %v344_v36 }
  0xcc   : > { %v333_v39 = vpop.permute.xlu1 %332  ;;  %v398_v40 = vpop.permute.xlu0 %397 }
  0xcd   : > { %v400_v41 = vsel %vm399_vm10, %v396_v33, %v398_v40  ;;  %v337_v42 = vsel %vm336_vm11, %v333_v39, %v335_v37 }
  0xce   : > { %458 = vmatpush.bf16.msra.mxu1 %v400_v41  ;;  %446 = vmatpush.bf16.msra.mxu0 %v337_v42 }
  0xd2   : > { %447 = vmatpush.bf16.msra.mxu0 %v817_v4 }
  0xd4   : > { %v391_v45 = vpop.permute.xlu1 %390  ;;  %v389_v46 = vpop.permute.xlu0 %388 }
  0xd5   : > { %v393_v47 = vsel %vm392_vm12, %v389_v46, %v391_v45  ;;  %448 = vmatmul.bf16.vlgmr.msra.gmra.mxu0 %v433_v44 }
  0xd6   : > { %459 = vmatpush.bf16.msra.mxu1 %v393_v47 }
  0xdc   : > { %v384_v50 = vpop.permute.xlu0 %383 }
  0xdd   : > { %v386_v51 = vsel %vm385_vm13, %v382_v49, %v384_v50 }
  0xde   : > { %460 = vmatpush.bf16.msra.mxu1 %v386_v51 }
  0xe1   : > { %623 = vmatmul.msk.bf16.vlgmr.msra.gmra.mxu1 %vm436_vm14, %v434_v52 }
 0x152   : > { %v449_v53 = vpop.f32.mrf.mxu0 }
 0x15a   : > { %v451_v55 = vpop.f32.mrf.mxu0 }
 0x15e   : > { %v462_v57 = vpop.f32.mrf.mxu1 }
 0x15f   : > { %v463_v58 = vadd.f32 %v462_v57, %v449_v53 }
 0x161   : > { %v489_v59 = vsel %vm488_vm15, %v463_v58, 0.0 }
 0x162   : > { %490 = vadd.xlane.f32.xlu1 %v489_v59  ;;  %v492_v60 = vmul.f32 %v489_v59, %v489_v59 }
 0x164   : > { %493 = vadd.xlane.f32.xlu2 %v492_v60 }
 0x166   : > { %v464_v61 = vpop.f32.mrf.mxu1 }
 0x1d5   : > { %v491_v62 = vpop.xlane.xlu1 %490 }
 0x1d7   : > { %v494_v63 = vpop.xlane.xlu2 %493 }
 0x1d8   : > { %v496_v0 = vsel %vm495_vm0, %v491_v62, %v494_v63 }
 0x1d9   : > { %498 = vst.msk [vmem:[%s314_s11] sm:$0xff] %vm497_vm1, %v496_v0 }
 0x1da PF: > { %s13_s16 = sadd.s32 1, %s722_s16   ;;  %s862_s12 = smov %s710_s13 }
 0x1db   : > { %p10_p10 = scmp.ge.s32.totalorder %s13_s16, 4   ;;  %s863_s13 = smov %s797_s21 }
 0x1dc   : > { %s864_s14 = smov %s718_s15  ;;  %s865_s15 = smov %s867_s17 }
 0x1dd   :  { %12 = sbr.rel (!%p10_p10) target bundleno = 3 (0x3), region = 165 }

</bundles_post_ra>
